<compile_context>
chip_gen: v5e
topology: v5e:2x2
jax: 0.10.0
libtpu: 0.0.40
codegen_flags: <defaults>
</compile_context>

<pallas_src>
import functools

import jax
import jax.numpy as jnp
from jax.experimental import pallas as pl
from jax.experimental.pallas import tpu as pltpu

HIDDEN = 200      # logical hidden size (nn.Linear(1, 200) / (200, 200) / (200, 1))
HIDDEN_PAD = 256  # padded to a full lane tile / MXU width


def mlp2_kernel(x_ref, w1_ref, b1_ref, w2_ref, w3_ref, b3_ref, o_ref,
                *, use_bf16_matmul: bool):
    # Feature-major: activations are (features, batch_tile).
    x_row = x_ref[...]                                           # (1, TM) lane-dense

    # Layer 1: Linear(1, H) + ReLU as a VPU broadcast outer product (K=1, so
    # the MXU would be 1/256 utilized).  Padding row 200 becomes constant 1.0
    # (b1 fold trick); rows 201..255 stay exactly 0.
    h1 = jnp.maximum(w1_ref[...] * x_row + b1_ref[...], 0.0)     # (Hp, TM) f32
    if use_bf16_matmul:
        # Single cast pass; W2^T is already bf16 (pre-cast on the host).
        h1 = h1.astype(jnp.bfloat16)

    # Layer 2: Linear(H, H) + ReLU.  b2 is folded into column 200 of W2^T via
    # the constant-1 row of h1, so no separate bias add is needed.
    h2 = jnp.dot(w2_ref[...], h1, preferred_element_type=jnp.float32)
    h2 = jnp.maximum(h2, 0.0)                                    # (Hp, TM) f32

    # Layer 3: Linear(H, 1) as a (1, Hp) x (Hp, TM) MXU matvec -> lane-dense
    # (1, TM) output row.  MXU has plenty of slack; keeps it off the VALU/XLU.
    y = jnp.dot(w3_ref[...], h2, preferred_element_type=jnp.float32) + b3_ref[...]
    o_ref[...] = y.astype(o_ref.dtype)


def _prep_params(p, *, hp=HIDDEN_PAD, use_bf16_matmul=True):
    """Feature-major transpose, zero-pad 200 -> 256, fold b2, pre-cast W2."""
    h = p["w2"].shape[0]
    pad = hp - h

    w1c = jnp.pad(p["w1"].astype(jnp.float32).T, ((0, pad), (0, 0)))        # (Hp, 1)
    b1c = jnp.pad(p["b1"].astype(jnp.float32).reshape(h, 1), ((0, pad), (0, 0)))
    b1c = b1c.at[h, 0].set(1.0)          # constant-1 row feeding the folded b2

    w2t = jnp.pad(p["w2"].astype(jnp.float32).T, ((0, pad), (0, pad)))      # (Hp, Hp)
    w2t = w2t.at[:h, h].set(p["b2"].astype(jnp.float32).reshape(h))         # fold b2
    if use_bf16_matmul:
        w2t = w2t.astype(jnp.bfloat16)   # host-side cast: no per-step re-cast

    w3r = jnp.pad(p["w3"].astype(jnp.float32).T, ((0, 0), (0, pad)))        # (1, Hp)
    b3 = p["b3"].astype(jnp.float32).reshape(1, 1)                          # (1, 1)
    return w1c, b1c, w2t, w3r, b3


def _pick_tile(n, tm_req):
    """Largest multiple-of-128 divisor of n that is <= tm_req; keep >= 2 steps."""
    candidates = [t for t in range(128, min(tm_req, n) + 1, 128) if n % t == 0]
    assert candidates, "batch size must be a multiple of 128 (pad the batch)"
    tm = candidates[-1]
    if n // tm < 2:  # give both v7x TensorCores a grid step when possible
        smaller = [t for t in candidates if n // t >= 2]
        if smaller:
            tm = smaller[-1]
    return tm


def mlp2_forward(x, params, *, tm=4096, use_bf16_matmul=True):
    """x: (N, 1) float32. params: dict of w1,b1,w2,b2,w3,b3 in (in, out) layout.

    use_bf16_matmul=True runs the 256x256 layer-2 matmul with bf16 operands and
    f32 accumulation (several-x faster on the MXU); set False for f32 accuracy.
    """
    N, one = x.shape
    assert one == 1, "MLP2 input feature dim must be 1"
    tm = _pick_tile(N, tm)

    w1c, b1c, w2t, w3r, b3 = _prep_params(params, use_bf16_matmul=use_bf16_matmul)
    x_row = x.reshape(1, N)  # batch along lanes -> lane-dense input/output

    # VMEM footprint: h1 (f32 [+bf16 copy]) + h2 (f32) + <1 MiB resident weights.
    vmem_est = 4 * HIDDEN_PAD * tm * 4 + (2 << 20)
    vmem_limit = min(2 * vmem_est, 48 << 20) if vmem_est > (12 << 20) else None

    grid = (N // tm,)
    full = lambda a: pl.BlockSpec(a.shape, lambda i: (0, 0))  # weights fully resident

    out_row = pl.pallas_call(
        functools.partial(mlp2_kernel, use_bf16_matmul=use_bf16_matmul),
        out_shape=jax.ShapeDtypeStruct((1, N), jnp.float32),
        grid_spec=pltpu.PrefetchScalarGridSpec(
            num_scalar_prefetch=0,
            grid=grid,
            in_specs=[
                pl.BlockSpec((1, tm), lambda i: (0, i)),  # x tile, lane-dense
                full(w1c), full(b1c),
                full(w2t),
                full(w3r), full(b3),
            ],
            out_specs=pl.BlockSpec((1, tm), lambda i: (0, i)),  # lane-dense output
        ),
        compiler_params=pltpu.CompilerParams(
            dimension_semantics=("parallel",),  # shard batch tiles across TCs (v7x)
            vmem_limit_bytes=vmem_limit,
        ),
    )(x_row, w1c, b1c, w2t, w3r, b3)
    return out_row.reshape(N, 1)


def init_params(key):
    """Deterministic synthetic init matching MLP2's layer shapes, (in, out) layout."""
    k1, k2, k3, k4, k5, k6 = jax.random.split(key, 6)
    w1 = jax.random.normal(k1, (1, HIDDEN), jnp.float32) * 0.1
    b1 = jax.random.normal(k2, (1, HIDDEN), jnp.float32) * 0.1
    w2 = jax.random.normal(k3, (HIDDEN, HIDDEN), jnp.float32) * 0.1
    b2 = jax.random.normal(k4, (1, HIDDEN), jnp.float32) * 0.1
    w3 = jax.random.normal(k5, (HIDDEN, 1), jnp.float32) * 0.1
    b3 = jax.random.normal(k6, (1, 1), jnp.float32) * 0.1
    return dict(w1=w1, b1=b1, w2=w2, b2=b2, w3=w3, b3=b3)


def mlp2_reference(x, p):
    hi = jax.lax.Precision.HIGHEST
    h1 = jnp.maximum(jnp.dot(x, p["w1"], precision=hi) + p["b1"], 0.0)
    h2 = jnp.maximum(jnp.dot(h1, p["w2"], precision=hi) + p["b2"], 0.0)
    return jnp.dot(h2, p["w3"], precision=hi) + p["b3"]


if __name__ == "__main__":
    key = jax.random.PRNGKey(0)
    kx, kp = jax.random.split(key)

    N = 256  # small test batch; auto-picked tm=128 -> grid of 2 exercises the pipeline
    x = jax.random.normal(kx, (N, 1), jnp.float32)
    params = init_params(kp)
    ref = mlp2_reference(x, params)

    # Default (bf16 MXU operands, f32 accumulation) path.
    out_bf16 = jax.block_until_ready(mlp2_forward(x, params))
    assert out_bf16.shape == (N, 1)
    assert jnp.allclose(out_bf16, ref, atol=3e-2, rtol=3e-2), "bf16 path mismatch"

    # Bit-accurate f32 path.
    out_f32 = jax.block_until_ready(mlp2_forward(x, params, use_bf16_matmul=False))
    assert jnp.allclose(out_f32, ref, atol=2e-3, rtol=2e-3), "f32 path mismatch"

    print("KERNEL_OK")
</pallas_src>

<mosaic_0001>
module attributes {stable_mosaic.version = 11 : i64} {
  func.func @mlp2_kernel(%arg0: i32, %arg1: memref<1x128xf32, #tpu.memory_space<vmem>>, %arg2: memref<256x1xf32, #tpu.memory_space<vmem>>, %arg3: memref<256x1xf32, #tpu.memory_space<vmem>>, %arg4: memref<256x256xbf16, #tpu.memory_space<vmem>>, %arg5: memref<1x256xf32, #tpu.memory_space<vmem>>, %arg6: memref<1x1xf32, #tpu.memory_space<vmem>>, %arg7: memref<1x128xf32, #tpu.memory_space<vmem>>) attributes {dimension_semantics = [#tpu.dimension_semantics<parallel>], iteration_bounds = array<i64: 2>, scalar_prefetch = 0 : i64, scratch_operands = 0 : i64, tpu.core_type = #tpu.core_type<tc>, window_params = [{transform_indices = @transform_0, window_bounds = array<i64: 1, 128>}, {pipeline_mode = #tpu.pipeline_mode<synchronous>, transform_indices = @transform_1, window_bounds = array<i64: 256, 1>}, {pipeline_mode = #tpu.pipeline_mode<synchronous>, transform_indices = @transform_2, window_bounds = array<i64: 256, 1>}, {pipeline_mode = #tpu.pipeline_mode<synchronous>, transform_indices = @transform_3, window_bounds = array<i64: 256, 256>}, {pipeline_mode = #tpu.pipeline_mode<synchronous>, transform_indices = @transform_4, window_bounds = array<i64: 1, 256>}, {pipeline_mode = #tpu.pipeline_mode<synchronous>, transform_indices = @transform_5, window_bounds = array<i64: 1, 1>}, {transform_indices = @transform_6, window_bounds = array<i64: 1, 128>}]} {
    %c0 = arith.constant 0 : index
    %c0_0 = arith.constant 0 : index
    %0 = vector.load %arg1[%c0, %c0_0] : memref<1x128xf32, #tpu.memory_space<vmem>>, vector<1x128xf32>
    %c0_1 = arith.constant 0 : index
    %c0_2 = arith.constant 0 : index
    %1 = vector.load %arg2[%c0_1, %c0_2] : memref<256x1xf32, #tpu.memory_space<vmem>>, vector<256x1xf32>
    %2 = vector.broadcast %1 : vector<256x1xf32> to vector<256x128xf32>
    %3 = vector.broadcast %0 : vector<1x128xf32> to vector<256x128xf32>
    %4 = arith.mulf %2, %3 : vector<256x128xf32>
    %c0_3 = arith.constant 0 : index
    %c0_4 = arith.constant 0 : index
    %5 = vector.load %arg3[%c0_3, %c0_4] : memref<256x1xf32, #tpu.memory_space<vmem>>, vector<256x1xf32>
    %6 = vector.broadcast %5 : vector<256x1xf32> to vector<256x128xf32>
    %7 = arith.addf %4, %6 : vector<256x128xf32>
    %cst = arith.constant 0.000000e+00 : f32
    %8 = vector.broadcast %cst : f32 to vector<256x128xf32>
    %9 = arith.maximumf %7, %8 : vector<256x128xf32>
    %10 = arith.truncf %9 : vector<256x128xf32> to vector<256x128xbf16>
    %c0_5 = arith.constant 0 : index
    %c0_6 = arith.constant 0 : index
    %11 = vector.load %arg4[%c0_5, %c0_6] : memref<256x256xbf16, #tpu.memory_space<vmem>>, vector<256x256xbf16>
    %cst_7 = arith.constant dense<0.000000e+00> : vector<256x128xf32>
    %12 = tpu.matmul %11, %10, %cst_7 {dimension_numbers = #tpu.dot_dimension_numbers<[1], [0], [0], [1], [0, 0, 1, 1], [], []>} : vector<256x256xbf16>, vector<256x128xbf16>, vector<256x128xf32> -> vector<256x128xf32>
    %cst_8 = arith.constant 0.000000e+00 : f32
    %13 = vector.broadcast %cst_8 : f32 to vector<256x128xf32>
    %14 = arith.maximumf %12, %13 : vector<256x128xf32>
    %c0_9 = arith.constant 0 : index
    %c0_10 = arith.constant 0 : index
    %15 = vector.load %arg5[%c0_9, %c0_10] : memref<1x256xf32, #tpu.memory_space<vmem>>, vector<1x256xf32>
    %cst_11 = arith.constant dense<0.000000e+00> : vector<1x128xf32>
    %16 = tpu.matmul %15, %14, %cst_11 {dimension_numbers = #tpu.dot_dimension_numbers<[1], [0], [0], [1], [0, 0, 1, 1], [], []>} : vector<1x256xf32>, vector<256x128xf32>, vector<1x128xf32> -> vector<1x128xf32>
    %c0_12 = arith.constant 0 : index
    %c0_13 = arith.constant 0 : index
    %17 = vector.load %arg6[%c0_12, %c0_13] : memref<1x1xf32, #tpu.memory_space<vmem>>, vector<1x1xf32>
    %18 = vector.broadcast %17 : vector<1x1xf32> to vector<1x128xf32>
    %19 = arith.addf %16, %18 : vector<1x128xf32>
    %c0_14 = arith.constant 0 : index
    %c0_15 = arith.constant 0 : index
    %20 = vector.load %arg7[%c0_14, %c0_15] : memref<1x128xf32, #tpu.memory_space<vmem>>, vector<1x128xf32>
    tpu.vector_store %arg7[%c0_14, %c0_15], %19 {strides = array<i32>} : memref<1x128xf32, #tpu.memory_space<vmem>>, vector<1x128xf32>,
    return
  }
  func.func @transform_0(%arg0: i32) -> (i32, i32) {
    %c0_i32 = arith.constant 0 : i32
    %c0_i32_0 = arith.constant 0 : i32
    return %c0_i32, %arg0 : i32, i32
  }
  func.func @transform_1(%arg0: i32) -> (i32, i32) {
    %c0_i32 = arith.constant 0 : i32
    %c0_i32_0 = arith.constant 0 : i32
    %c0_i32_1 = arith.constant 0 : i32
    return %c0_i32, %c0_i32_0 : i32, i32
  }
  func.func @transform_2(%arg0: i32) -> (i32, i32) {
    %c0_i32 = arith.constant 0 : i32
    %c0_i32_0 = arith.constant 0 : i32
    %c0_i32_1 = arith.constant 0 : i32
    return %c0_i32, %c0_i32_0 : i32, i32
  }
  func.func @transform_3(%arg0: i32) -> (i32, i32) {
    %c0_i32 = arith.constant 0 : i32
    %c0_i32_0 = arith.constant 0 : i32
    %c0_i32_1 = arith.constant 0 : i32
    return %c0_i32, %c0_i32_0 : i32, i32
  }
  func.func @transform_4(%arg0: i32) -> (i32, i32) {
    %c0_i32 = arith.constant 0 : i32
    %c0_i32_0 = arith.constant 0 : i32
    %c0_i32_1 = arith.constant 0 : i32
    return %c0_i32, %c0_i32_0 : i32, i32
  }
  func.func @transform_5(%arg0: i32) -> (i32, i32) {
    %c0_i32 = arith.constant 0 : i32
    %c0_i32_0 = arith.constant 0 : i32
    %c0_i32_1 = arith.constant 0 : i32
    return %c0_i32, %c0_i32_0 : i32, i32
  }
  func.func @transform_6(%arg0: i32) -> (i32, i32) {
    %c0_i32 = arith.constant 0 : i32
    %c0_i32_0 = arith.constant 0 : i32
    return %c0_i32, %arg0 : i32, i32
  }
}

</mosaic_0001>

<bundles_post_ra>
// kernel: tpu_custom_call.1
= control target key start
LH: loop header
LB: loop body
LE: loop exit
PB: predicated region body
PF: predicated region fallthrough
CT: control target
= control target key end

     0   :  { %s2166_s0 = inlined_call_operand.vmem [shape: f32[1,256], index: 0, kind: input, shape index: {}]   ;;  %s2167_s1 = inlined_call_operand.vmem [shape: f32[256,1], index: 1, kind: input, shape index: {}]   ;;  %s2168_s2 = inlined_call_operand.vmem [shape: f32[256,1], index: 2, kind: input, shape index: {}]   ;;  %s2169_s3 = inlined_call_operand.vmem [shape: bf16[256,256], index: 3, kind: input, shape index: {}]   ;;  %s2170_s4 = inlined_call_operand.vmem [shape: f32[1,256], index: 4, kind: input, shape index: {}]   ;;  %s2171_s5 = inlined_call_operand.<no memory space> [shape: f32[1,1], index: 5, kind: input, shape index: {}]   ;;  %s2172_s6 = inlined_call_operand.hbm [shape: f32[1,256], index: 6, kind: output, shape index: {}]  }
   0x1   :  { %v11_v0 = vstv %s2171_s5 }
   0x2   :  { %12 = vst [vmem:[#allocation2] sm:$0x1] %v11_v0 }
   0x3   :  { %13 = vsyncpa [#allocation4], 0 }
   0x4   :  { %15 = vsyncpa [#allocation4 + $0x1], 0  ;;  %s1595_s23 = smov 0   ;;  %s1597_s24 = smov 0  }
   0x5   :  { %s1599_s25 = smov 0   ;;  %s1601_s26 = smov 0  }
   0x6 LB: > { %s1616_s5 = sadd.s32 4294967295, %s1554_s26   ;;  %s1266_s27 = sadd.s32 4294967294, %s1554_s26   ;;  %s1554_s26 = sphi %s1601_s26, %s2178_s26   ;;  %s1550_s25 = sphi %s1599_s25, %s2177_s25   ;;  %s1546_s24 = sphi %s1597_s24, %s2176_s24   ;;  %s1542_s23 = sphi %s1595_s23, %s2175_s23  }
   0x7   : > { %s1620_s28 = sadd.s32 1, %s1554_s26   ;;  %s159_s29 = sadd.s32 1, %s1550_s25 }
   0x8   : > { %s156_s30 = ssub.s32 %s1554_s26, %s1620_s28  ;;  %p169_p0 = scmp.ne.s32.totalorder %s1550_s25, %s1546_s24 }
   0x9   : > { %p157_p1 = scmp.eq.s32.totalorder %s156_s30, 0  ;;  %p170_p2 = scmp.eq.s32.totalorder %s1616_s5, 1 }
   0xa   : > { %p175_p3 = scmp.ne.s32.totalorder %s1546_s24, %s1542_s23  ;;  %p176_p4 = scmp.eq.s32.totalorder %s1266_s27, 1 }
   0xb   : > { %s1631_s7 = scalar_select %p157_p1, %s1550_s25, %s159_s29  }
   0xc   : > { %p1633_p5 = por %p170_p2, %p169_p0  ;;  %p1637_p6 = por %p176_p4, %p175_p3 }
   0xd   : > { %p1269_p7 = scmp.ge.s32.totalorder %s1554_s26, 1  ;;  %p215_p8 = scmp.lt.s32.totalorder %s1554_s26, 3 }
   0xf   : > { %p216_p9 = pnand %p1269_p7, %p215_p8 }
  0x10   : > { %p242_p10 = scmp.lt.s32.totalorder (!%p216_p9), %s1616_s5, 1  ;;  %s240_s12 = sand.u32 (!%p216_p9), 1, %s1546_s24  }
  0x11   : > { %219 = sbr.rel (%p216_p9) target bundleno = 737 (0x2e1), region = 44  ;;  %s1210_s15 = scalar_lea.hbm (!%p216_p9), %s2172_s6, %s1616_s5 }
  0x12   : > { %s241_s17 = scalar_lea.vmem (!%p216_p9), [#allocation3], %s240_s12  ;;  %s1214_s20 = sshll.u32 (!%p216_p9), %s1210_s15, 4  ;;  %s1215_s20 = int_to_ptr.hbm [resolvable:$true] %s1214_s20 }
  0x13   : > { %s1212_s18 = sshll.u32 (!%p216_p9), %s241_s17, 4  ;;  %s1202_s21 = scalar_lea.sflag (!%p216_p9), [#allocation4], %s240_s12  ;;  %s1213_s18 = int_to_ptr.vmem [resolvable:$true] %s1212_s18 }
  0x14   : > { %s1506_s22 = sshra.s32 (!%p216_p9), %s1215_s20, 4  ;;  %s1512_s30 = scalar_lea.hbm (!%p216_p9), %s2172_s6, 2  ;;  %s1507_s22 = int_to_ptr.hbm [resolvable:$true] %s1506_s22 }
  0x15   : > { %s1508_s27 = scalar_lea.hbm (!%p216_p9), %s1507_s22, 1  ;;  %p1513_p0 = scmp.lt.s32.totalorder (!%p216_p9), %s1507_s22, %s2172_s6 }
  0x16   : > { %v487_v1 = vld [vmem:[%s2168_s2 + $0x70] sm:$0xff]  ;;  %v1556_v4 = vmov 0   ;;  %s1654_s16 = scalar_select %p242_p10, %s1616_s5, 1  ;;  %v488_v5 = vld [vmem:[%s2168_s2 + $0x78] sm:$0xff]  ;;  %v258_v8 = vld [vmem:[%s2167_s1 + $0x60] sm:$0xff] }
  0x17   : > { %v276_v2 = vld [vmem:[%s2167_s1 + $0xf0] sm:$0xff]  ;;  %1490 = vset.pattern.permute.xlu2 %v1556_v4  ;;  %1489 = vset.pattern.permute.xlu1 %v1556_v4  ;;  %v277_v6 = vld [vmem:[%s2167_s1 + $0xf8] sm:$0xff]  ;;  %v275_v11 = vld [vmem:[%s2167_s1 + $0xe8] sm:$0xff]  ;;  %p1509_p11 = scmp.ne.s32.totalorder %s1507_s22, %s1508_s27  ;;  %p1514_p1 = scmp.lt.s32.totalorder %s1512_s30, %s1508_s27 }
  0x18   : > { %v260_v3 = vld [vmem:[%s2167_s1 + $0x70] sm:$0xff]  ;;  %1488 = vset.pattern.permute.xlu0 %v1556_v4  ;;  %577 = vperm.xlu2 %1490, %v487_v1   ;;  %s244_s19 = scalar_lea.vmem %s2166_s0, %s1654_s16  ;;  %v261_v7 = vld [vmem:[%s2167_s1 + $0x78] sm:$0xff]  ;;  %v274_v12 = vld [vmem:[%s2167_s1 + $0xe0] sm:$0xff] }
  0x19   : > { %430 = vperm.xlu1 %1489, %v276_v2   ;;  %350 = vperm.xlu0 %1488, %v260_v3   ;;  %v504_v9 = vld [vmem:[%s2168_s2 + $0xf8] sm:$0xff]  ;;  %v503_v10 = vld [vmem:[%s2168_s2 + $0xf0] sm:$0xff]  ;;  %v259_v13 = vld [vmem:[%s2167_s1 + $0x68] sm:$0xff]  ;;  %p1510_p12 = pnand %p1509_p11, %p1633_p5  ;;  %p1515_p2 = por %p1514_p1, %p1513_p0 }
  0x1a   : > { %v501_v14 = vld [vmem:[%s2168_s2 + $0xe0] sm:$0xff]  ;;  %v486_v15 = vld [vmem:[%s2168_s2 + $0x68] sm:$0xff]  ;;  %v257_v17 = vld [vmem:[%s2167_s1 + $0x58] sm:$0xff] }
  0x1b   : > { %v485_v16 = vld [vmem:[%s2168_s2 + $0x60] sm:$0xff]  ;;  %v502_v18 = vld [vmem:[%s2168_s2 + $0xe8] sm:$0xff]  ;;  %v256_v19 = vld [vmem:[%s2167_s1 + $0x50] sm:$0xff]  ;;  %p1511_p13 = pneg %p1510_p12 }
  0x1c   : > { %v483_v20 = vld [vmem:[%s2168_s2 + $0x50] sm:$0xff]  ;;  %v273_v22 = vld [vmem:[%s2167_s1 + $0xd8] sm:$0xff]  ;;  %v270_v26 = vld [vmem:[%s2167_s1 + $0xc0] sm:$0xff] }
  0x1d   : > { %v272_v21 = vld [vmem:[%s2167_s1 + $0xd0] sm:$0xff]  ;;  %v500_v23 = vld [vmem:[%s2168_s2 + $0xd8] sm:$0xff]  ;;  %v255_v27 = vld [vmem:[%s2167_s1 + $0x48] sm:$0xff]  ;;  %p1516_p3 = pnand %p1515_p2, %p1511_p13 }
  0x1e   : > { %v484_v24 = vld [vmem:[%s2168_s2 + $0x58] sm:$0xff]  ;;  %v499_v25 = vld [vmem:[%s2168_s2 + $0xd0] sm:$0xff]  ;;  %v254_v28 = vld [vmem:[%s2167_s1 + $0x40] sm:$0xff] }
  0x1f   : > { %v482_v29 = vld [vmem:[%s2168_s2 + $0x48] sm:$0xff]  ;;  %v481_v30 = vld [vmem:[%s2168_s2 + $0x40] sm:$0xff]  ;;  %v252_v32 = vld [vmem:[%s2167_s1 + $0x30] sm:$0xff] }
  0x20   : > { %582 = vperm.xlu2 %1490, %v488_v5   ;;  %v271_v31 = vld [vmem:[%s2167_s1 + $0xc8] sm:$0xff]  ;;  %v497_v34 = vld [vmem:[%s2168_s2 + $0xc0] sm:$0xff]  ;;  %v269_v35 = vld [vmem:[%s2167_s1 + $0xb8] sm:$0xff] }
  0x21   : > { %435 = vperm.xlu1 %1489, %v277_v6   ;;  %355 = vperm.xlu0 %1488, %v261_v7   ;;  %v498_v33 = vld [vmem:[%s2168_s2 + $0xc8] sm:$0xff]  ;;  %v268_v36 = vld [vmem:[%s2167_s1 + $0xb0] sm:$0xff]  ;;  %v253_v37 = vld [vmem:[%s2167_s1 + $0x38] sm:$0xff] }
  0x22   : > { %v495_v39 = vld [vmem:[%s2168_s2 + $0xb0] sm:$0xff]  ;;  %v480_v40 = vld [vmem:[%s2168_s2 + $0x38] sm:$0xff]  ;;  %v251_v43 = vld [vmem:[%s2167_s1 + $0x28] sm:$0xff] }
  0x23   : > { %v479_v41 = vld [vmem:[%s2168_s2 + $0x30] sm:$0xff]  ;;  %v496_v44 = vld [vmem:[%s2168_s2 + $0xb8] sm:$0xff]  ;;  %v250_v45 = vld [vmem:[%s2167_s1 + $0x20] sm:$0xff] }
  0x24   : > { %v477_v47 = vld [vmem:[%s2168_s2 + $0x20] sm:$0xff]  ;;  %v267_v49 = vld [vmem:[%s2167_s1 + $0xa8] sm:$0xff]  ;;  %v264_v63 = vld [vmem:[%s2167_s1 + $0x90] sm:$0xff] }
  0x25   : > { %v266_v48 = vld [vmem:[%s2167_s1 + $0xa0] sm:$0xff]  ;;  %v494_v54 = vld [vmem:[%s2168_s2 + $0xa8] sm:$0xff]  ;;  %v249_v1 = vld [vmem:[%s2167_s1 + $0x18] sm:$0xff] }
  0x26   : > { %v1793_v53 = vld [vmem:[%s244_s19] ss:$0 sm:$0xff]  ;;  %v478_v55 = vld [vmem:[%s2168_s2 + $0x28] sm:$0xff]  ;;  %v248_v2 = vld [vmem:[%s2167_s1 + $0x10] sm:$0xff] }
  0x27   : > { %v493_v56 = vld [vmem:[%s2168_s2 + $0xa0] sm:$0xff] }
  0x28   : > { %340 = vperm.xlu2 %1490, %v258_v8  }
  0x29   : > { %662 = vperm.xlu1 %1489, %v504_v9   ;;  %657 = vperm.xlu0 %1488, %v503_v10  }
  0x30   : > { %425 = vperm.xlu2 %1490, %v275_v11  }
  0x31   : > { %420 = vperm.xlu1 %1489, %v274_v12   ;;  %345 = vperm.xlu0 %1488, %v259_v13   ;;  %v476_v13 = vld [vmem:[%s2168_s2 + $0x18] sm:$0xff] }
  0x38   : > { %647 = vperm.xlu2 %1490, %v501_v14  }
  0x39   : > { %572 = vperm.xlu1 %1489, %v486_v15   ;;  %567 = vperm.xlu0 %1488, %v485_v16   ;;  %v475_v16 = vld [vmem:[%s2168_s2 + $0x10] sm:$0xff] }
  0x40   : > { %335 = vperm.xlu2 %1490, %v257_v17   ;;  %v265_v17 = vld [vmem:[%s2167_s1 + $0x98] sm:$0xff] }
  0x41   : > { %652 = vperm.xlu0 %1488, %v502_v18   ;;  %330 = vperm.xlu1 %1489, %v256_v19  }
  0x48   : > { %557 = vperm.xlu2 %1490, %v483_v20  }
  0x49   : > { %410 = vperm.xlu0 %1488, %v272_v21   ;;  %415 = vperm.xlu1 %1489, %v273_v22   ;;  %v246_v22 = vld [vmem:[%s2167_s1] sm:$0xff] }
  0x50   : > { %642 = vperm.xlu2 %1490, %v500_v23   ;;  %v492_v23 = vld [vmem:[%s2168_s2 + $0x98] sm:$0xff] }
  0x51   : > { %562 = vperm.xlu0 %1488, %v484_v24   ;;  %637 = vperm.xlu1 %1489, %v499_v25   ;;  %v491_v24 = vld [vmem:[%s2168_s2 + $0x90] sm:$0xff] }
  0x58   : > { %400 = vperm.xlu2 %1490, %v270_v26  }
  0x59   : > { %325 = vperm.xlu1 %1489, %v255_v27   ;;  %320 = vperm.xlu0 %1488, %v254_v28  }
  0x60   : > { %552 = vperm.xlu2 %1490, %v482_v29  }
  0x61   : > { %547 = vperm.xlu1 %1489, %v481_v30   ;;  %405 = vperm.xlu0 %1488, %v271_v31  }
  0x68   : > { %310 = vperm.xlu2 %1490, %v252_v32   ;;  %v263_v32 = vld [vmem:[%s2167_s1 + $0x88] sm:$0xff] }
  0x69   : > { %632 = vperm.xlu1 %1489, %v498_v33   ;;  %627 = vperm.xlu0 %1488, %v497_v34  }
  0x70   : > { %395 = vperm.xlu2 %1490, %v269_v35  }
  0x71   : > { %390 = vperm.xlu1 %1489, %v268_v36   ;;  %315 = vperm.xlu0 %1488, %v253_v37   ;;  %v262_v36 = vld [vmem:[%s2167_s1 + $0x80] sm:$0xff]  ;;  %v247_v37 = vld [vmem:[%s2167_s1 + $0x8] sm:$0xff] }
  0x72   : > { %v578_v38 = vpop.permute.xlu2 %577 }
  0x78   : > { %617 = vperm.xlu2 %1490, %v495_v39  }
  0x79   : > { %542 = vperm.xlu1 %1489, %v480_v40   ;;  %537 = vperm.xlu0 %1488, %v479_v41  }
  0x7a   : > { %v583_v42 = vpop.permute.xlu2 %582 }
  0x80   : > { %305 = vperm.xlu2 %1490, %v251_v43  }
  0x81   : > { %622 = vperm.xlu0 %1488, %v496_v44   ;;  %300 = vperm.xlu1 %1489, %v250_v45   ;;  %v489_v44 = vld [vmem:[%s2168_s2 + $0x80] sm:$0xff] }
  0x82   : > { %v341_v46 = vpop.permute.xlu2 %340 }
  0x83   : > { %v453_v25 = vmul.f32 %v1793_v53, %v341_v46 }
  0x88   : > { %527 = vperm.xlu2 %1490, %v477_v47  }
  0x89   : > { %380 = vperm.xlu0 %1488, %v266_v48   ;;  %385 = vperm.xlu1 %1489, %v267_v49   ;;  %v474_v48 = vld [vmem:[%s2168_s2 + $0x8] sm:$0xff]  ;;  %v473_v49 = vld [vmem:[%s2168_s2] sm:$0xff] }
  0x8a   : > { %v1786_v50 = vpop.permute.xlu2 %425 }
  0x8b   : > { %v431_v51 = vpop.permute.xlu1 %430  ;;  %v351_v52 = vpop.permute.xlu0 %350  ;;  %v470_v39 = vmul.f32 %v1793_v53, %v1786_v50 }
  0x8c   : > { %v455_v57 = vmul.f32 %v1793_v53, %v351_v52  ;;  %v471_v5 = vmul.f32 %v1793_v53, %v431_v51 }
  0x8e   : > { %v679_v61 = vadd.f32 %v578_v38, %v455_v57  ;;  %v490_v57 = vld [vmem:[%s2168_s2 + $0x88] sm:$0xff] }
  0x90   : > { %612 = vperm.xlu2 %1490, %v494_v54   ;;  %v711_v3 = vmax.f32 %v679_v61, 0.0 }
  0x91   : > { %532 = vperm.xlu0 %1488, %v478_v55   ;;  %607 = vperm.xlu1 %1489, %v493_v56   ;;  %v1148_v56 = vld [vmem:[#allocation2] sm:$0x1] }
  0x92   : > { %v648_v58 = vpop.permute.xlu2 %647 }
  0x93   : > { %v436_v59 = vpop.permute.xlu1 %435  ;;  %v356_v60 = vpop.permute.xlu0 %355 }
  0x94   : > { %v456_v62 = vmul.f32 %v1793_v53, %v356_v60  ;;  %v472_v6 = vmul.f32 %v1793_v53, %v436_v59 }
  0x96   : > { %v680_v0 = vadd.f32 %v583_v42, %v456_v62 }
  0x98   : > { %v712_v4 = vmax.f32 %v680_v0, 0.0  ;;  %370 = vperm.xlu2 %1490, %v264_v63  }
  0x99   : > { %295 = vperm.xlu1 %1489, %v249_v1   ;;  %290 = vperm.xlu0 %1488, %v248_v2  }
  0x9a   : > { %v1817_v7 = vpop.permute.xlu2 %335  ;;  %v736_v8 = vpack.c.bf16 %v712_v4, %v711_v3 }
  0x9b   : > { %v663_v9 = vpop.permute.xlu1 %662  ;;  %v658_v10 = vpop.permute.xlu0 %657  ;;  %v452_v59 = vmul.f32 %v1793_v53, %v1817_v7 }
  0x9c   : > { %v696_v11 = vadd.f32 %v663_v9, %v472_v6  ;;  %v695_v12 = vadd.f32 %v658_v10, %v471_v5  ;;  %937 = vmatpush.bf16.msra.mxu0 %v736_v8  ;;  %1432 = vmatpush.bf16.msra.mxu2 %v736_v8 }
  0x9e   : > { %v728_v14 = vmax.f32 %v696_v11, 0.0  ;;  %v727_v15 = vmax.f32 %v695_v12, 0.0 }
  0xa0   : > { %522 = vperm.xlu2 %1490, %v476_v13   ;;  %v744_v18 = vpack.c.bf16 %v728_v14, %v727_v15 }
  0xa1   : > { %517 = vperm.xlu1 %1489, %v475_v16   ;;  %375 = vperm.xlu0 %1488, %v265_v17  }
  0xa2   : > { %1026 = vmatpush.bf16.msra.mxu1 %v744_v18  ;;  %1440 = vmatpush.bf16.msra.mxu3 %v744_v18  ;;  %v558_v19 = vpop.permute.xlu2 %557 }
  0xa3   : > { %v421_v20 = vpop.permute.xlu1 %420  ;;  %v346_v21 = vpop.permute.xlu0 %345 }
  0xa4   : > { %v454_v26 = vmul.f32 %v1793_v53, %v346_v21  ;;  %v469_v33 = vmul.f32 %v1793_v53, %v421_v20 }
  0xa6   : > { %v693_v40 = vadd.f32 %v648_v58, %v469_v33 }
  0xa8   : > { %280 = vperm.xlu2 %1490, %v246_v22   ;;  %v725_v45 = vmax.f32 %v693_v40, 0.0 }
  0xa9   : > { %602 = vperm.xlu1 %1489, %v492_v23   ;;  %597 = vperm.xlu0 %1488, %v491_v24  }
  0xaa   : > { %v643_v31 = vpop.permute.xlu2 %642 }
  0xab   : > { %v573_v27 = vpop.permute.xlu1 %572  ;;  %v568_v28 = vpop.permute.xlu0 %567 }
  0xac   : > { %v678_v29 = vadd.f32 %v573_v27, %v454_v26  ;;  %v677_v30 = vadd.f32 %v568_v28, %v453_v25 }
  0xae   : > { %v710_v34 = vmax.f32 %v678_v29, 0.0  ;;  %v709_v35 = vmax.f32 %v677_v30, 0.0 }
  0xb0   : > { %365 = vperm.xlu2 %1490, %v263_v32   ;;  %v735_v38 = vpack.c.bf16 %v710_v34, %v709_v35 }
  0xb1   : > { %360 = vperm.xlu1 %1489, %v262_v36   ;;  %285 = vperm.xlu0 %1488, %v247_v37  }
  0xb2   : > { %938 = vmatpush.bf16.msra.mxu0 %v735_v38  ;;  %1433 = vmatpush.bf16.msra.mxu2 %v735_v38  ;;  %v401_v47 = vpop.permute.xlu2 %400 }
  0xb3   : > { %v653_v41 = vpop.permute.xlu0 %652  ;;  %v331_v42 = vpop.permute.xlu1 %330  ;;  %v465_v22 = vmul.f32 %v1793_v53, %v401_v47 }
  0xb4   : > { %v694_v43 = vadd.f32 %v653_v41, %v470_v39  ;;  %v451_v54 = vmul.f32 %v1793_v53, %v331_v42 }
  0xb6   : > { %v726_v46 = vmax.f32 %v694_v43, 0.0  ;;  %v675_v60 = vadd.f32 %v558_v19, %v451_v54 }
  0xb8   : > { %587 = vperm.xlu2 %1490, %v489_v44   ;;  %v743_v50 = vpack.c.bf16 %v726_v46, %v725_v45  ;;  %v707_v3 = vmax.f32 %v675_v60, 0.0 }
  0xb9   : > { %512 = vperm.xlu1 %1489, %v474_v48   ;;  %507 = vperm.xlu0 %1488, %v473_v49  }
  0xba   : > { %1027 = vmatpush.bf16.msra.mxu1 %v743_v50  ;;  %1441 = vmatpush.bf16.msra.mxu3 %v743_v50  ;;  %v553_v58 = vpop.permute.xlu2 %552 }
  0xbb   : > { %v411_v51 = vpop.permute.xlu0 %410  ;;  %v416_v52 = vpop.permute.xlu1 %415 }
  0xbc   : > { %v468_v55 = vmul.f32 %v1793_v53, %v416_v52  ;;  %v467_v61 = vmul.f32 %v1793_v53, %v411_v51 }
  0xbe   : > { %v692_v62 = vadd.f32 %v643_v31, %v468_v55 }
  0xc0   : > { %v724_v4 = vmax.f32 %v692_v62, 0.0 }
  0xc1   : > { %1151 = vperm.xlu1 %1489, %v1148_v56   ;;  %592 = vperm.xlu0 %1488, %v490_v57  }
  0xc2   : > { %v311_v10 = vpop.permute.xlu2 %310 }
  0xc3   : > { %v563_v63 = vpop.permute.xlu0 %562  ;;  %v638_v0 = vpop.permute.xlu1 %637  ;;  %v447_v35 = vmul.f32 %v1793_v53, %v311_v10 }
  0xc4   : > { %v676_v1 = vadd.f32 %v563_v63, %v452_v59  ;;  %v691_v2 = vadd.f32 %v638_v0, %v467_v61 }
  0xc6   : > { %v708_v5 = vmax.f32 %v676_v1, 0.0  ;;  %v723_v6 = vmax.f32 %v691_v2, 0.0 }
  0xc8   : > { %v734_v8 = vpack.c.bf16 %v708_v5, %v707_v3  ;;  %v742_v9 = vpack.c.bf16 %v724_v4, %v723_v6 }
  0xca   : > { %939 = vmatpush.bf16.msra.mxu0 %v734_v8  ;;  %1434 = vmatpush.bf16.msra.mxu2 %v734_v8  ;;  %v396_v17 = vpop.permute.xlu2 %395 }
  0xcb   : > { %1028 = vmatpush.bf16.msra.mxu1 %v742_v9  ;;  %1442 = vmatpush.bf16.msra.mxu3 %v742_v9  ;;  %v326_v7 = vpop.permute.xlu1 %325  ;;  %v321_v11 = vpop.permute.xlu0 %320  ;;  %v464_v45 = vmul.f32 %v1793_v53, %v396_v17 }
  0xcc   : > { %v450_v12 = vmul.f32 %v1793_v53, %v326_v7  ;;  %v449_v14 = vmul.f32 %v1793_v53, %v321_v11 }
  0xce   : > { %v674_v13 = vadd.f32 %v553_v58, %v450_v12 }
  0xd0   : > { %v706_v19 = vmax.f32 %v674_v13, 0.0 }
  0xd2   : > { %v618_v28 = vpop.permute.xlu2 %617 }
  0xd3   : > { %v548_v15 = vpop.permute.xlu1 %547  ;;  %v406_v16 = vpop.permute.xlu0 %405 }
  0xd4   : > { %v673_v18 = vadd.f32 %v548_v15, %v449_v14  ;;  %v466_v23 = vmul.f32 %v1793_v53, %v406_v16 }
  0xd6   : > { %v705_v20 = vmax.f32 %v673_v18, 0.0 }
  0xd8   : > { %v733_v21 = vpack.c.bf16 %v706_v19, %v705_v20 }
  0xda   : > { %940 = vmatpush.bf16.msra.mxu0 %v733_v21  ;;  %1435 = vmatpush.bf16.msra.mxu2 %v733_v21  ;;  %v306_v34 = vpop.permute.xlu2 %305 }
  0xdb   : > { %v633_v24 = vpop.permute.xlu1 %632  ;;  %v628_v25 = vpop.permute.xlu0 %627  ;;  %v446_v60 = vmul.f32 %v1793_v53, %v306_v34 }
  0xdc   : > { %v690_v26 = vadd.f32 %v633_v24, %v466_v23  ;;  %v689_v27 = vadd.f32 %v628_v25, %v465_v22 }
  0xde   : > { %v722_v29 = vmax.f32 %v690_v26, 0.0  ;;  %v721_v30 = vmax.f32 %v689_v27, 0.0 }
  0xe0   : > { %v741_v31 = vpack.c.bf16 %v722_v29, %v721_v30 }
  0xe2   : > { %1029 = vmatpush.bf16.msra.mxu1 %v741_v31  ;;  %1443 = vmatpush.bf16.msra.mxu3 %v741_v31  ;;  %v528_v47 = vpop.permute.xlu2 %527 }
  0xe3   : > { %v391_v32 = vpop.permute.xlu1 %390  ;;  %v316_v33 = vpop.permute.xlu0 %315 }
  0xe4   : > { %v448_v36 = vmul.f32 %v1793_v53, %v316_v33  ;;  %v463_v41 = vmul.f32 %v1793_v53, %v391_v32 }
  0xe6   : > { %v687_v46 = vadd.f32 %v618_v28, %v463_v41 }
  0xe8   : > { %v719_v51 = vmax.f32 %v687_v46, 0.0 }
  0xea   : > { %v613_v57 = vpop.permute.xlu2 %612 }
  0xeb   : > { %v543_v37 = vpop.permute.xlu1 %542  ;;  %v538_v38 = vpop.permute.xlu0 %537 }
  0xec   : > { %v672_v39 = vadd.f32 %v543_v37, %v448_v36  ;;  %v671_v40 = vadd.f32 %v538_v38, %v447_v35 }
  0xee   : > { %v704_v42 = vmax.f32 %v672_v39, 0.0  ;;  %v703_v43 = vmax.f32 %v671_v40, 0.0 }
  0xf0   : > { %v732_v44 = vpack.c.bf16 %v704_v42, %v703_v43  ;;  %v1272_v42 = vld [vmem:[%s2169_s3] sm:$0xf]  ;;  %v1401_v43 = vld [vmem:[%s2169_s3 + $0x4] sm:$0xf0] }
  0xf2   : > { %941 = vmatpush.bf16.msra.mxu0 %v732_v44  ;;  %1436 = vmatpush.bf16.msra.mxu2 %v732_v44  ;;  %v371_v9 = vpop.permute.xlu2 %370 }
  0xf3   : > { %v623_v48 = vpop.permute.xlu0 %622  ;;  %v301_v49 = vpop.permute.xlu1 %300  ;;  %v459_v23 = vmul.f32 %v1793_v53, %v371_v9  ;;  %v1402_v9 = vld [vmem:[%s2169_s3 + $0x14] sm:$0xf] }
  0xf4   : > { %v688_v50 = vadd.f32 %v623_v48, %v464_v45  ;;  %v445_v58 = vmul.f32 %v1793_v53, %v301_v49  ;;  %v1419_v48 = vld [vmem:[%s2169_s3 + $0x94] sm:$0xf0] }
  0xf6   : > { %v720_v52 = vmax.f32 %v688_v50, 0.0  ;;  %v669_v61 = vadd.f32 %v528_v47, %v445_v58  ;;  %v1344_v47 = vld [vmem:[%s2169_s3 + $0x90] sm:$0xf]  ;;  %v1400_v58 = vld [vmem:[%s2169_s3 + $0x4] sm:$0xf] }
  0xf8   : > { %v740_v54 = vpack.c.bf16 %v720_v52, %v719_v51  ;;  %v701_v4 = vmax.f32 %v669_v61, 0.0  ;;  %v1273_v51 = vor.u32 %v1401_v43, %v1272_v42  ;;  %v1345_v52 = vor.u32 %v1419_v48, %v1344_v47  ;;  %v1378_v47 = vld [vmem:[%s2169_s3 + $0xd8] sm:$0xf0] }
  0xfa   : > { %1030 = vmatpush.bf16.msra.mxu1 %v740_v54  ;;  %1444 = vmatpush.bf16.msra.mxu3 %v740_v54  ;;  %v523_v14 = vpop.permute.xlu2 %522 }
  0xfb   : > { %v381_v55 = vpop.permute.xlu0 %380  ;;  %v386_v56 = vpop.permute.xlu1 %385 }
  0xfc   : > { %v462_v59 = vmul.f32 %v1793_v53, %v386_v56  ;;  %v461_v62 = vmul.f32 %v1793_v53, %v381_v55 }
  0xfe   : > { %v686_v63 = vadd.f32 %v613_v57, %v462_v59  ;;  %v1274_v59 = vld [vmem:[%s2169_s3 + $0x8] sm:$0xf0] }
 0x100   : > { %v718_v5 = vmax.f32 %v686_v63, 0.0 }
 0x102   : > { %v281_v29 = vpop.permute.xlu2 %280 }
 0x103   : > { %v533_v0 = vpop.permute.xlu0 %532  ;;  %v608_v1 = vpop.permute.xlu1 %607  ;;  %v441_v36 = vmul.f32 %v1793_v53, %v281_v29  ;;  %v1425_v29 = vld [vmem:[%s2169_s3 + $0xc4] sm:$0xf0] }
 0x104   : > { %v670_v2 = vadd.f32 %v533_v0, %v446_v60  ;;  %v685_v3 = vadd.f32 %v608_v1, %v461_v62  ;;  %v1346_v62 = vld [vmem:[%s2169_s3 + $0x98] sm:$0xf0]  ;;  %v1277_v0 = vor.u32 %v1400_v58, %v1274_v59  ;;  %v1428_v59 = vld [vmem:[%s2169_s3 + $0xe4] sm:$0xf] }
 0x105   : > { %v1314_v58 = vld [vmem:[%s2169_s3 + $0x58] sm:$0xf0] }
 0x106   : > { %v702_v6 = vmax.f32 %v670_v2, 0.0  ;;  %v717_v8 = vmax.f32 %v685_v3, 0.0  ;;  %v1280_v2 = vld [vmem:[%s2169_s3 + $0x10] sm:$0xf]  ;;  %v1403_v3 = vld [vmem:[%s2169_s3 + $0x14] sm:$0xf0] }
 0x108   : > { %v731_v10 = vpack.c.bf16 %v702_v6, %v701_v4  ;;  %v739_v7 = vpack.c.bf16 %v718_v5, %v717_v8  ;;  %v1352_v4 = vld [vmem:[%s2169_s3 + $0xa0] sm:$0xf]  ;;  %v1421_v5 = vld [vmem:[%s2169_s3 + $0xa4] sm:$0xf0]  ;;  %v1281_v6 = vor.u32 %v1403_v3, %v1280_v2 }
 0x109   : > { %v1353_v8 = vor.u32 %v1421_v5, %v1352_v4  ;;  %v1412_v4 = vld [vmem:[%s2169_s3 + $0x64] sm:$0xf]  ;;  %v1322_v5 = vld [vmem:[%s2169_s3 + $0x68] sm:$0xf0] }
 0x10a   : > { %942 = vmatpush.bf16.msra.mxu0 %v731_v10  ;;  %1437 = vmatpush.bf16.msra.mxu2 %v731_v10  ;;  %v366_v35 = vpop.permute.xlu2 %365  ;;  %v1282_v10 = vld [vmem:[%s2169_s3 + $0x18] sm:$0xf0] }
 0x10b   : > { %1031 = vmatpush.bf16.msra.mxu1 %v739_v7  ;;  %1445 = vmatpush.bf16.msra.mxu3 %v739_v7  ;;  %v296_v11 = vpop.permute.xlu1 %295  ;;  %v291_v12 = vpop.permute.xlu0 %290  ;;  %v458_v54 = vmul.f32 %v1793_v53, %v366_v35  ;;  %v1420_v7 = vld [vmem:[%s2169_s3 + $0xa4] sm:$0xf]  ;;  %v1370_v35 = vld [vmem:[%s2169_s3 + $0xc8] sm:$0xf0] }
 0x10c   : > { %v444_v13 = vmul.f32 %v1793_v53, %v296_v11  ;;  %v443_v16 = vmul.f32 %v1793_v53, %v291_v12  ;;  %v1354_v11 = vld [vmem:[%s2169_s3 + $0xa8] sm:$0xf0]  ;;  %v1285_v12 = vor.u32 %v1402_v9, %v1282_v10  ;;  %v1325_v9 = vor.u32 %v1412_v4, %v1322_v5 }
 0x10e   : > { %v668_v15 = vadd.f32 %v523_v14, %v444_v13  ;;  %v1357_v13 = vor.u32 %v1420_v7, %v1354_v11  ;;  %v1288_v14 = vld [vmem:[%s2169_s3 + $0x20] sm:$0xf]  ;;  %v1328_v7 = vld [vmem:[%s2169_s3 + $0x70] sm:$0xf]  ;;  %v1415_v11 = vld [vmem:[%s2169_s3 + $0x74] sm:$0xf0] }
 0x110   : > { %v700_v20 = vmax.f32 %v668_v15, 0.0  ;;  %v1405_v15 = vld [vmem:[%s2169_s3 + $0x24] sm:$0xf0] }
 0x112   : > { %v588_v50 = vpop.permute.xlu2 %587 }
 0x113   : > { %v518_v17 = vpop.permute.xlu1 %517  ;;  %v376_v18 = vpop.permute.xlu0 %375 }
 0x114   : > { %v667_v19 = vadd.f32 %v518_v17, %v443_v16  ;;  %v460_v24 = vmul.f32 %v1793_v53, %v376_v18  ;;  %v1360_v16 = vld [vmem:[%s2169_s3 + $0xb0] sm:$0xf]  ;;  %v1423_v17 = vld [vmem:[%s2169_s3 + $0xb4] sm:$0xf0]  ;;  %v1289_v18 = vor.u32 %v1405_v15, %v1288_v14  ;;  %v1330_v14 = vld [vmem:[%s2169_s3 + $0x78] sm:$0xf0] }
 0x116   : > { %v699_v21 = vmax.f32 %v667_v19, 0.0  ;;  %v1361_v19 = vor.u32 %v1423_v17, %v1360_v16  ;;  %v1336_v16 = vld [vmem:[%s2169_s3 + $0x80] sm:$0xf]  ;;  %v1417_v17 = vld [vmem:[%s2169_s3 + $0x84] sm:$0xf0] }
 0x118   : > { %v730_v22 = vpack.c.bf16 %v700_v20, %v699_v21  ;;  %v1404_v20 = vld [vmem:[%s2169_s3 + $0x24] sm:$0xf]  ;;  %v1290_v21 = vld [vmem:[%s2169_s3 + $0x28] sm:$0xf0] }
 0x11a   : > { %943 = vmatpush.bf16.msra.mxu0 %v730_v22  ;;  %1438 = vmatpush.bf16.msra.mxu2 %v730_v22  ;;  %v1422_v22 = vld [vmem:[%s2169_s3 + $0xb4] sm:$0xf] }
 0x11b   : > { %v603_v25 = vpop.permute.xlu1 %602  ;;  %v598_v26 = vpop.permute.xlu0 %597 }
 0x11c   : > { %v684_v27 = vadd.f32 %v603_v25, %v460_v24  ;;  %v683_v28 = vadd.f32 %v598_v26, %v459_v23  ;;  %v1362_v23 = vld [vmem:[%s2169_s3 + $0xb8] sm:$0xf0]  ;;  %v1293_v24 = vor.u32 %v1404_v20, %v1290_v21  ;;  %v1296_v26 = vld [vmem:[%s2169_s3 + $0x30] sm:$0xf]  ;;  %v1416_v20 = vld [vmem:[%s2169_s3 + $0x84] sm:$0xf] }
 0x11d   : > { %v1365_v25 = vor.u32 %v1422_v22, %v1362_v23  ;;  %v1338_v21 = vld [vmem:[%s2169_s3 + $0x88] sm:$0xf0] }
 0x11e   : > { %v716_v30 = vmax.f32 %v684_v27, 0.0  ;;  %v715_v31 = vmax.f32 %v683_v28, 0.0  ;;  %v1407_v27 = vld [vmem:[%s2169_s3 + $0x34] sm:$0xf0]  ;;  %v1368_v28 = vld [vmem:[%s2169_s3 + $0xc0] sm:$0xf]  ;;  %v1341_v23 = vor.u32 %v1416_v20, %v1338_v21 }
 0x120   : > { %v738_v32 = vpack.c.bf16 %v716_v30, %v715_v31  ;;  %v1297_v30 = vor.u32 %v1407_v27, %v1296_v26  ;;  %v1369_v31 = vor.u32 %v1425_v29, %v1368_v28 }
 0x122   : > { %1032 = vmatpush.bf16.msra.mxu1 %v738_v32  ;;  %1446 = vmatpush.bf16.msra.mxu3 %v738_v32  ;;  %v1406_v32 = vld [vmem:[%s2169_s3 + $0x34] sm:$0xf] }
 0x123   : > { %v361_v33 = vpop.permute.xlu1 %360  ;;  %v286_v34 = vpop.permute.xlu0 %285 }
 0x124   : > { %v442_v37 = vmul.f32 %v1793_v53, %v286_v34  ;;  %v457_v44 = vmul.f32 %v1793_v53, %v361_v33  ;;  %v1418_v53 = vld [vmem:[%s2169_s3 + $0x94] sm:$0xf]  ;;  %v1298_v33 = vld [vmem:[%s2169_s3 + $0x38] sm:$0xf0]  ;;  %v1424_v34 = vld [vmem:[%s2169_s3 + $0xc4] sm:$0xf] }
 0x125   : > { %v1349_v1 = vor.u32 %v1418_v53, %v1346_v62  ;;  %v1320_v62 = vld [vmem:[%s2169_s3 + $0x60] sm:$0xf] }
 0x126   : > { %v681_v55 = vadd.f32 %v588_v50, %v457_v44  ;;  %v1408_v44 = vld [vmem:[%s2169_s3 + $0x44] sm:$0xf]  ;;  %v1312_v50 = vld [vmem:[%s2169_s3 + $0x50] sm:$0xf] }
 0x128   : > { %v713_v60 = vmax.f32 %v681_v55, 0.0 }
 0x12b   : > { %v513_v38 = vpop.permute.xlu1 %512  ;;  %v508_v39 = vpop.permute.xlu0 %507 }
 0x12c   : > { %v666_v40 = vadd.f32 %v513_v38, %v442_v37  ;;  %v665_v41 = vadd.f32 %v508_v39, %v441_v36  ;;  %v1301_v36 = vor.u32 %v1406_v32, %v1298_v33  ;;  %v1373_v37 = vor.u32 %v1424_v34, %v1370_v35  ;;  %v1304_v38 = vld [vmem:[%s2169_s3 + $0x40] sm:$0xf]  ;;  %v1409_v39 = vld [vmem:[%s2169_s3 + $0x44] sm:$0xf0] }
 0x12d   : > { %v1305_v42 = vor.u32 %v1409_v39, %v1304_v38 }
 0x12e   : > { %v698_v45 = vmax.f32 %v666_v40, 0.0  ;;  %v697_v46 = vmax.f32 %v665_v41, 0.0  ;;  %v1376_v40 = vld [vmem:[%s2169_s3 + $0xd0] sm:$0xf]  ;;  %v1427_v41 = vld [vmem:[%s2169_s3 + $0xd4] sm:$0xf0] }
 0x12f   : > { %v1377_v43 = vor.u32 %v1427_v41, %v1376_v40 }
 0x130   : > { %v729_v49 = vpack.c.bf16 %v698_v45, %v697_v46  ;;  %v1306_v45 = vld [vmem:[%s2169_s3 + $0x48] sm:$0xf0]  ;;  %v1426_v46 = vld [vmem:[%s2169_s3 + $0xd4] sm:$0xf] }
 0x131   : > { %v1309_v48 = vor.u32 %v1408_v44, %v1306_v45 }
 0x132   : > { %944 = vmatpush.bf16.msra.mxu0 %v729_v49  ;;  %1439 = vmatpush.bf16.msra.mxu2 %v729_v49  ;;  %v1381_v49 = vor.u32 %v1426_v46, %v1378_v47 }
 0x133   : > { %v593_v56 = vpop.permute.xlu0 %592 }
 0x134   : > { %v682_v57 = vadd.f32 %v593_v56, %v458_v54  ;;  %v1429_v54 = vld [vmem:[%s2169_s3 + $0xe4] sm:$0xf0] }
 0x135   : > { %945 = vmatmul.bf16.vlgmr.msra.gmra.mxu0 %v1273_v51  ;;  %990 = vmatmul.bf16.vlgmr.msra.gmra.mxu2 %v1345_v52  ;;  %v1411_v51 = vld [vmem:[%s2169_s3 + $0x54] sm:$0xf0]  ;;  %v1384_v52 = vld [vmem:[%s2169_s3 + $0xe0] sm:$0xf] }
 0x136   : > { %v714_v61 = vmax.f32 %v682_v57, 0.0  ;;  %v1313_v55 = vor.u32 %v1411_v51, %v1312_v50  ;;  %v1385_v56 = vor.u32 %v1429_v54, %v1384_v52  ;;  %v1410_v57 = vld [vmem:[%s2169_s3 + $0x54] sm:$0xf] }
 0x138   : > { %v737_v63 = vpack.c.bf16 %v714_v61, %v713_v60  ;;  %v1386_v60 = vld [vmem:[%s2169_s3 + $0xe8] sm:$0xf0]  ;;  %v1317_v61 = vor.u32 %v1410_v57, %v1314_v58 }
 0x139   : > { %v1389_v53 = vor.u32 %v1428_v59, %v1386_v60 }
 0x13a   : > { %1033 = vmatpush.bf16.msra.mxu1 %v737_v63  ;;  %1447 = vmatpush.bf16.msra.mxu3 %v737_v63  ;;  %v1413_v63 = vld [vmem:[%s2169_s3 + $0x64] sm:$0xf0] }
 0x13b   : > { %v1321_v2 = vor.u32 %v1413_v63, %v1320_v62 }
 0x13d   : > { %1034 = vmatmul.bf16.vlgmr.msra.gmra.mxu1 %v1277_v0  ;;  %1079 = vmatmul.bf16.vlgmr.msra.gmra.mxu3 %v1349_v1  ;;  %v1392_v0 = vld [vmem:[%s2169_s3 + $0xf0] sm:$0xf]  ;;  %v1431_v1 = vld [vmem:[%s2169_s3 + $0xf4] sm:$0xf0] }
 0x13e   : > { %v1393_v3 = vor.u32 %v1431_v1, %v1392_v0 }
 0x145   : > { %950 = vmatmul.bf16.gmra.mxu0 %v1281_v6  ;;  %995 = vmatmul.bf16.gmra.mxu2 %v1353_v8  ;;  %v1430_v6 = vld [vmem:[%s2169_s3 + $0xf4] sm:$0xf]  ;;  %v1394_v8 = vld [vmem:[%s2169_s3 + $0xf8] sm:$0xf0] }
 0x146   : > { %v1397_v10 = vor.u32 %v1430_v6, %v1394_v8 }
 0x14d   : > { %1039 = vmatmul.bf16.gmra.mxu1 %v1285_v12  ;;  %1084 = vmatmul.bf16.gmra.mxu3 %v1357_v13  ;;  %v1329_v12 = vor.u32 %v1415_v11, %v1328_v7  ;;  %v1414_v13 = vld [vmem:[%s2169_s3 + $0x74] sm:$0xf] }
 0x14e   : > { %v1333_v15 = vor.u32 %v1414_v13, %v1330_v14 }
 0x155   : > { %955 = vmatmul.bf16.gmra.mxu0 %v1289_v18  ;;  %1000 = vmatmul.bf16.gmra.mxu2 %v1361_v19  ;;  %v1337_v18 = vor.u32 %v1417_v17, %v1336_v16 }
 0x15d   : > { %1044 = vmatmul.bf16.gmra.mxu1 %v1293_v24  ;;  %1089 = vmatmul.bf16.gmra.mxu3 %v1365_v25 }
 0x165   : > { %960 = vmatmul.bf16.gmra.mxu0 %v1297_v30  ;;  %1005 = vmatmul.bf16.gmra.mxu2 %v1369_v31 }
 0x16d   : > { %1049 = vmatmul.bf16.gmra.mxu1 %v1301_v36  ;;  %1094 = vmatmul.bf16.gmra.mxu3 %v1373_v37 }
 0x175   : > { %965 = vmatmul.bf16.gmra.mxu0 %v1305_v42  ;;  %1010 = vmatmul.bf16.gmra.mxu2 %v1377_v43 }
 0x17d   : > { %1054 = vmatmul.bf16.gmra.mxu1 %v1309_v48  ;;  %1099 = vmatmul.bf16.gmra.mxu3 %v1381_v49 }
 0x185   : > { %970 = vmatmul.bf16.gmra.mxu0 %v1313_v55  ;;  %1015 = vmatmul.bf16.gmra.mxu2 %v1385_v56 }
 0x18d   : > { %1059 = vmatmul.bf16.gmra.mxu1 %v1317_v61  ;;  %1104 = vmatmul.bf16.gmra.mxu3 %v1389_v53 }
 0x195   : > { %975 = vmatmul.bf16.gmra.mxu0 %v1321_v2  ;;  %1020 = vmatmul.bf16.gmra.mxu2 %v1393_v3 }
 0x19d   : > { %1064 = vmatmul.bf16.gmra.mxu1 %v1325_v9  ;;  %1109 = vmatmul.bf16.gmra.mxu3 %v1397_v10 }
 0x1a5   : > { %980 = vmatmul.bf16.gmra.mxu0 %v1329_v12 }
 0x1ad   : > { %1069 = vmatmul.bf16.gmra.mxu1 %v1333_v15 }
 0x1b2   : > { %v946_v19 = vpop.f32.mrf.mxu0 }
 0x1b5   : > { %985 = vmatmul.bf16.gmra.mxu0 %v1337_v18 }
 0x1b8   : > { %v991_v22 = vpop.f32.mrf.mxu2 }
 0x1ba   : > { %v948_v24 = vpop.f32.mrf.mxu0  ;;  %v1035_v25 = vpop.f32.mrf.mxu1 }
 0x1bb   : > { %v2080_v26 = vadd.f32 %v1035_v25, %v946_v19 }
 0x1bd   : > { %1074 = vmatmul.bf16.gmra.mxu1 %v1341_v23 }
 0x1c0   : > { %v1080_v27 = vpop.f32.mrf.mxu3  ;;  %v993_v28 = vpop.f32.mrf.mxu2 }
 0x1c1   : > { %v2082_v29 = vadd.f32 %v1080_v27, %v991_v22 }
 0x1c2   : > { %v951_v30 = vpop.f32.mrf.mxu0  ;;  %v1037_v31 = vpop.f32.mrf.mxu1 }
 0x1c3   : > { %v2084_v32 = vadd.f32 %v1037_v31, %v948_v24 }
 0x1c8   : > { %v1082_v33 = vpop.f32.mrf.mxu3  ;;  %v996_v34 = vpop.f32.mrf.mxu2 }
 0x1c9   : > { %v2086_v35 = vadd.f32 %v1082_v33, %v993_v28 }
 0x1ca   : > { %v953_v36 = vpop.f32.mrf.mxu0  ;;  %v1040_v37 = vpop.f32.mrf.mxu1 }
 0x1cb   : > { %v2088_v38 = vadd.f32 %v1040_v37, %v951_v30 }
 0x1d0   : > { %v1085_v39 = vpop.f32.mrf.mxu3  ;;  %v998_v40 = vpop.f32.mrf.mxu2 }
 0x1d1   : > { %v2090_v41 = vadd.f32 %v1085_v39, %v996_v34 }
 0x1d2   : > { %v956_v42 = vpop.f32.mrf.mxu0  ;;  %v1042_v43 = vpop.f32.mrf.mxu1 }
 0x1d3   : > { %v2092_v44 = vadd.f32 %v1042_v43, %v953_v36 }
 0x1d8   : > { %v1087_v45 = vpop.f32.mrf.mxu3  ;;  %v1001_v46 = vpop.f32.mrf.mxu2 }
 0x1d9   : > { %v2094_v47 = vadd.f32 %v1087_v45, %v998_v40 }
 0x1da   : > { %v958_v48 = vpop.f32.mrf.mxu0  ;;  %v1045_v49 = vpop.f32.mrf.mxu1 }
 0x1db   : > { %v2096_v50 = vadd.f32 %v1045_v49, %v956_v42 }
 0x1e0   : > { %v1090_v51 = vpop.f32.mrf.mxu3  ;;  %v1003_v52 = vpop.f32.mrf.mxu2 }
 0x1e1   : > { %v2098_v54 = vadd.f32 %v1090_v51, %v1001_v46 }
 0x1e2   : > { %v961_v55 = vpop.f32.mrf.mxu0  ;;  %v1047_v56 = vpop.f32.mrf.mxu1 }
 0x1e3   : > { %v2100_v57 = vadd.f32 %v1047_v56, %v958_v48 }
 0x1e8   : > { %v1092_v58 = vpop.f32.mrf.mxu3  ;;  %v1006_v59 = vpop.f32.mrf.mxu2 }
 0x1e9   : > { %v2102_v60 = vadd.f32 %v1092_v58, %v1003_v52 }
 0x1ea   : > { %v963_v61 = vpop.f32.mrf.mxu0  ;;  %v1050_v53 = vpop.f32.mrf.mxu1 }
 0x1eb   : > { %v2104_v62 = vadd.f32 %v1050_v53, %v961_v55 }
 0x1f0   : > { %v1095_v63 = vpop.f32.mrf.mxu3  ;;  %v1008_v0 = vpop.f32.mrf.mxu2 }
 0x1f1   : > { %v2106_v1 = vadd.f32 %v1095_v63, %v1006_v59 }
 0x1f2   : > { %v966_v2 = vpop.f32.mrf.mxu0  ;;  %v1052_v3 = vpop.f32.mrf.mxu1 }
 0x1f3   : > { %v2108_v4 = vadd.f32 %v1052_v3, %v963_v61 }
 0x1f8   : > { %v1097_v5 = vpop.f32.mrf.mxu3  ;;  %v1011_v6 = vpop.f32.mrf.mxu2 }
 0x1f9   : > { %v1098_v55 = vadd.f32 %v1097_v5, %v1008_v0  ;;  %v1138_v5 = vmax.f32 %v2102_v60, 0.0 }
 0x1fa   : > { %v2110_v8 = vpop.f32.mrf.mxu0  ;;  %v1055_v9 = vpop.f32.mrf.mxu1 }
 0x1fb   : > { %v2112_v10 = vadd.f32 %v1055_v9, %v966_v2  ;;  %v1140_v3 = vmax.f32 %v1098_v55, 0.0 }
 0x200   : > { %v1100_v7 = vpop.f32.mrf.mxu3  ;;  %v1013_v11 = vpop.f32.mrf.mxu2 }
 0x201   : > { %v1101_v49 = vadd.f32 %v1100_v7, %v1011_v6  ;;  %v1139_v6 = vmax.f32 %v2106_v1, 0.0  ;;  %v1136_v1 = vmax.f32 %v2094_v47, 0.0  ;;  %v1133_v47 = vmax.f32 %v2082_v29, 0.0 }
 0x202   : > { %v971_v12 = vpop.f32.mrf.mxu0  ;;  %v1057_v13 = vpop.f32.mrf.mxu1  ;;  %v1119_v29 = vmax.f32 %v2096_v50, 0.0 }
 0x203   : > { %v1141_v61 = vmax.f32 %v1101_v49, 0.0  ;;  %v1152_v50 = vpop.permute.xlu1 %1151 }
 0x208   : > { %v1102_v14 = vpop.f32.mrf.mxu3  ;;  %v1016_v15 = vpop.f32.mrf.mxu2 }
 0x209   : > { %v1103_v46 = vadd.f32 %v1102_v14, %v1013_v11 }
 0x20a   : > { %v973_v16 = vpop.f32.mrf.mxu0  ;;  %v1060_v17 = vpop.f32.mrf.mxu1 }
 0x20b   : > { %v1142_v56 = vmax.f32 %v1103_v46, 0.0  ;;  %v1061_v14 = vadd.f32 %v1060_v17, %v971_v12  ;;  %v1134_v17 = vmax.f32 %v2086_v35, 0.0  ;;  %v1147_v35 = vld [vmem:[%s2170_s4] sm:$0x3] }
 0x210   : > { %v1105_v18 = vpop.f32.mrf.mxu3  ;;  %v1018_v19 = vpop.f32.mrf.mxu2 }
 0x211   : > { %v1106_v43 = vadd.f32 %v1105_v18, %v1016_v15 }
 0x212   : > { %v976_v20 = vpop.f32.mrf.mxu0  ;;  %v1062_v21 = vpop.f32.mrf.mxu1 }
 0x213   : > { %v1143_v51 = vmax.f32 %v1106_v43, 0.0  ;;  %v1063_v7 = vadd.f32 %v1062_v21, %v973_v16  ;;  %v1125_v16 = vmax.f32 %v1061_v14, 0.0 }
 0x218   : > { %v1107_v22 = vpop.f32.mrf.mxu3  ;;  %v1021_v25 = vpop.f32.mrf.mxu2 }
 0x219   : > { %v1108_v39 = vadd.f32 %v1107_v22, %v1018_v19  ;;  %v1137_v19 = vmax.f32 %v2098_v54, 0.0  ;;  %v1126_v22 = vmax.f32 %v1063_v7, 0.0  ;;  %v1123_v54 = vmax.f32 %v2112_v10, 0.0 }
 0x21a   : > { %v978_v23 = vpop.f32.mrf.mxu0  ;;  %v1065_v24 = vpop.f32.mrf.mxu1  ;;  %v1157_v10 = vperm.slane %v1147_v35, 1 }
 0x21b   : > { %v1144_v48 = vmax.f32 %v1108_v39, 0.0  ;;  %v1066_v9 = vadd.f32 %v1065_v24, %v976_v20  ;;  %v1058_v20 = vadd.f32 %v1057_v13, %v2110_v8  ;;  %v1122_v24 = vmax.f32 %v2108_v4, 0.0 }
 0x21c   : > { %v1117_v4 = vmax.f32 %v2088_v38, 0.0 }
 0x21d   : > { %v1127_v18 = vmax.f32 %v1066_v9, 0.0  ;;  %v1124_v60 = vmax.f32 %v1058_v20, 0.0 }
 0x220   : > { %v1110_v27 = vpop.f32.mrf.mxu3  ;;  %v1023_v31 = vpop.f32.mrf.mxu2 }
 0x221   : > { %v1111_v33 = vadd.f32 %v1110_v27, %v1021_v25 }
 0x222   : > { %v1067_v28 = vpop.f32.mrf.mxu1  ;;  %v981_v30 = vpop.f32.mrf.mxu0 }
 0x223   : > { %v1145_v40 = vmax.f32 %v1111_v33, 0.0  ;;  %v1068_v53 = vadd.f32 %v1067_v28, %v978_v23  ;;  %v1135_v23 = vmax.f32 %v2090_v41, 0.0  ;;  %v1121_v41 = vmax.f32 %v2104_v62, 0.0 }
 0x224   : > { %v1120_v28 = vmax.f32 %v2100_v57, 0.0  ;;  %v1118_v62 = vmax.f32 %v2092_v44, 0.0  ;;  %v1115_v57 = vmax.f32 %v2080_v26, 0.0  ;;  %v1154_v44 = vperm.slane %v1152_v50, 0 }
 0x225   : > { %v1128_v11 = vmax.f32 %v1068_v53, 0.0 }
 0x228   : > { %v1112_v34 = vpop.f32.mrf.mxu3 }
 0x229   : > { %v1113_v36 = vadd.f32 %v1112_v34, %v1023_v31  ;;  %v1156_v31 = vperm.slane %v1147_v35, 0 }
 0x22a   : > { %v1070_v37 = vpop.f32.mrf.mxu1  ;;  %v983_v45 = vpop.f32.mrf.mxu0 }
 0x22b   : > { %v1146_v42 = vmax.f32 %v1113_v36, 0.0  ;;  %v1071_v58 = vadd.f32 %v1070_v37, %v981_v30  ;;  %v1116_v30 = vmax.f32 %v2084_v32, 0.0 }
 0x22d   : > { %1180 = vmatpush.msrb.mxu3 %v1146_v42  ;;  %v1129_v15 = vmax.f32 %v1071_v58, 0.0 }
 0x22f   : > { %1181 = vmatpush.msrb.mxu3 %v1145_v40 }
 0x231   : > { %1182 = vmatpush.msrb.mxu3 %v1144_v48 }
 0x232   : > { %v1072_v52 = vpop.f32.mrf.mxu1  ;;  %v986_v2 = vpop.f32.mrf.mxu0 }
 0x233   : > { %v1073_v59 = vadd.f32 %v1072_v52, %v983_v45  ;;  %1183 = vmatpush.msrb.mxu3 %v1143_v51 }
 0x235   : > { %v1130_v63 = vmax.f32 %v1073_v59, 0.0  ;;  %1184 = vmatpush.msrb.mxu3 %v1142_v56 }
 0x237   : > { %1160 = vmatpush.msrb.mxu2 %v1130_v63  ;;  %1185 = vmatpush.msrb.mxu3 %v1141_v61 }
 0x239   : > { %1161 = vmatpush.msrb.mxu2 %v1129_v15  ;;  %1186 = vmatpush.msrb.mxu3 %v1140_v3 }
 0x23a   : > { %v1075_v0 = vpop.f32.mrf.mxu1  ;;  %v988_v21 = vpop.f32.mrf.mxu0 }
 0x23b   : > { %1162 = vmatpush.msrb.mxu2 %v1128_v11  ;;  %1187 = vmatpush.msrb.mxu3 %v1139_v6  ;;  %v1076_v8 = vadd.f32 %v1075_v0, %v986_v2 }
 0x23d   : > { %1163 = vmatpush.msrb.mxu2 %v1127_v18  ;;  %1188 = vmatpush.msrb.mxu3 %v1138_v5  ;;  %v1131_v27 = vmax.f32 %v1076_v8, 0.0 }
 0x23f   : > { %1164 = vmatpush.msrb.mxu2 %v1126_v22  ;;  %1189 = vmatpush.msrb.mxu3 %v1137_v19 }
 0x241   : > { %1165 = vmatpush.msrb.mxu2 %v1125_v16  ;;  %1190 = vmatpush.msrb.mxu3 %v1136_v1 }
 0x242   : > { %v1077_v12 = vpop.f32.mrf.mxu1 }
 0x243   : > { %1166 = vmatpush.msrb.mxu2 %v1124_v60  ;;  %1191 = vmatpush.msrb.mxu3 %v1135_v23  ;;  %v1078_v13 = vadd.f32 %v1077_v12, %v988_v21 }
 0x245   : > { %1167 = vmatpush.msrb.mxu2 %v1123_v54  ;;  %1192 = vmatpush.msrb.mxu3 %v1134_v17  ;;  %v1132_v25 = vmax.f32 %v1078_v13, 0.0 }
 0x247   : > { %1168 = vmatpush.msrb.mxu2 %v1122_v24  ;;  %1193 = vmatpush.msrb.mxu3 %v1133_v47 }
 0x249   : > { %1169 = vmatpush.msrb.mxu2 %v1121_v41  ;;  %1194 = vmatpush.msrb.mxu3 %v1132_v25 }
 0x24b   : > { %1170 = vmatpush.msrb.mxu2 %v1120_v28  ;;  %1195 = vmatpush.msrb.mxu3 %v1131_v27 }
 0x24c   : > { %1196 = vmatmul.f32.vlgmr.msrb.gmra.mxu3 %v1157_v10 }
 0x24d   : > { %1171 = vmatpush.msrb.mxu2 %v1119_v29 }
 0x24f   : > { %1172 = vmatpush.msrb.mxu2 %v1118_v62 }
 0x251   : > { %1173 = vmatpush.msrb.mxu2 %v1117_v4 }
 0x253   : > { %1174 = vmatpush.msrb.mxu2 %v1116_v30 }
 0x255   : > { %1175 = vmatpush.msrb.mxu2 %v1115_v57 }
 0x256   : > { %1176 = vmatmul.f32.vlgmr.msrb.gmra.mxu2 %v1156_v31 }
 0x2cf   : > { %v1197_v38 = vpop.f32.mrf.mxu3 }
 0x2d9   : > { %v1177_v33 = vpop.f32.mrf.mxu2 }
 0x2da   : > { %v1178_v32 = vadd.f32 %v1177_v33, %v1154_v44 }
 0x2dc   : > { %v1198_v34 = vadd.f32 %v1197_v38, %v1178_v32 }
 0x2de   : > { %1200 = vst [vmem:[%s241_s17] sm:$0x1] %v1198_v34 }
 0x2df   : > { %1519 = shalt.err (!%p1516_p3)
}
 0x2e0   : > { %1448 = dma.vmem_to_hbm [thread:$0]  (%p1633_p5), %s1213_s18, 16, %s1215_s20, %s1202_s21  }
 0x2e1 PF: > { %p1454_p4 = scmp.ge.s32.totalorder %s1554_s26, 2  ;;  %s1226_s16 = sand.u32 1, %s1542_s23  }
 0x2e2   : > { %s1227_s19 = scalar_lea.sflag [#allocation4], %s1226_s16 }
 0x2e3   : > { %p1451_p7 = pnand %p1454_p4, %p1637_p6 }
 0x2e5   : > { %p1452_p8 = pneg %p1451_p7 }
 0x2e7   : > { %1537 = dma.done.wait (%p1452_p8), %s1227_s19, 16  }
 0x2e8   : > { %1539 = vsyncadd (%p1452_p8), %s1227_s19, 4294967280  ;;  %p18_p9 = scmp.ge.s32.totalorder %s1620_s28, 4   ;;  %s2175_s23 = smov %s1546_s24 }
 0x2e9   : > { %s2176_s24 = smov %s1550_s25  ;;  %s2177_s25 = smov %s1631_s7 }
 0x2ea   : > { %s2178_s26 = smov %s1620_s28  ;;  %20 = sbr.rel (!%p18_p9) target bundleno = 6 (0x6), region = 79 }
 0x2ef   :  { %1232 = vsyncpa [#allocation4], 1 }
 0x2f0   :  { %1234 = vsyncpa [#allocation4 + $0x1], 1 }

</bundles_post_ra>
